<compile_context>
chip_gen: v5e
topology: v5e:2x2
jax: 0.10.0
libtpu: 0.0.40
codegen_flags: <defaults>
</compile_context>

<pallas_src>
import jax
import jax.numpy as jnp
import numpy as np
from jax import lax
from jax.experimental import pallas as pl
from jax.experimental.pallas import tpu as pltpu

HIDDEN_SIZE = 8
INPUT_SIZE = 2
NUM_LAYERS = 2
OUTPUT_SIZE = 1

LANE = 128   # TPU lane width (last dim)
SUB = 8      # TPU sublane width (second-to-last dim)

# Lane layout of the fused (BP, 128) recurrence operand.
H1_LO = 0                    # h1 state  -> lanes 0..7
H0_LO = 8                    # h0 state  -> lanes 8..15
B1_LANE = 16                 # constant 1.0 feeding layer-1 bias row
X_LO = 17                    # x_t       -> lanes 17..18
B0_LANE = 19                 # constant 1.0 feeding layer-0 bias row


def rnn_kernel(x_ref,                      # (T, BP, 128)  x + bias-one lanes
               w0_ref, w1_ref,             # (128, 128)    fused layer weights
               wout_ref, bout_ref,         # (128, 128), (1, 128)
               out_ref):                   # (BP, 128)
    T, BP, _ = x_ref.shape
    zeros = jnp.zeros((BP, LANE), jnp.float32)

    def step(t, carry):
        h0, h1 = carry                      # vreg carries: no VMEM round trip
        xt = x_ref[t]                       # (BP, 128)
        # layer 0: tanh([h0 ; x ; 1] @ W0c)  -> result in lanes 8..15
        h0n = jnp.tanh(jnp.dot(h0 + xt, w0_ref[...],
                               preferred_element_type=jnp.float32))
        # layer 1: tanh([h1 ; h0' ; 1] @ W1c) -> result in lanes 0..7
        # (h1 + xt) is independent of h0n, so it overlaps with the layer-0 matmul.
        h1n = jnp.tanh(jnp.dot((h1 + xt) + h0n, w1_ref[...],
                               preferred_element_type=jnp.float32))
        return (h0n, h1n)

    _, h1 = lax.fori_loop(0, T, step, (zeros, zeros), unroll=True)

    # final linear + sigmoid on the last timestep's top-layer hidden state
    logits = jnp.dot(h1, wout_ref[...],
                     preferred_element_type=jnp.float32) + bout_ref[...]
    out_ref[...] = jax.nn.sigmoid(logits)


def prepare_padded_params(p):
    """Pad/fuse weights once, outside the per-call path.

    W0c rows: 8..15 = W_hh0, 17..18 = W_ih0, 19 = b0   (cols 8..15)
    W1c rows: 0..7  = W_hh1,  8..15 = W_ih1, 16 = b1   (cols 0..7)
    """
    w0 = jnp.zeros((LANE, LANE), jnp.float32)
    w0 = w0.at[H0_LO:H0_LO + HIDDEN_SIZE, H0_LO:H0_LO + HIDDEN_SIZE].set(p['whh0'])
    w0 = w0.at[X_LO:X_LO + INPUT_SIZE, H0_LO:H0_LO + HIDDEN_SIZE].set(p['wih0'])
    w0 = w0.at[B0_LANE, H0_LO:H0_LO + HIDDEN_SIZE].set(p['b0'])

    w1 = jnp.zeros((LANE, LANE), jnp.float32)
    w1 = w1.at[H1_LO:H1_LO + HIDDEN_SIZE, H1_LO:H1_LO + HIDDEN_SIZE].set(p['whh1'])
    w1 = w1.at[H0_LO:H0_LO + HIDDEN_SIZE, H1_LO:H1_LO + HIDDEN_SIZE].set(p['wih1'])
    w1 = w1.at[B1_LANE, H1_LO:H1_LO + HIDDEN_SIZE].set(p['b1'])

    wout = jnp.zeros((LANE, LANE), jnp.float32)
    wout = wout.at[H1_LO:H1_LO + HIDDEN_SIZE, :OUTPUT_SIZE].set(p['wout'])
    bout = jnp.zeros((1, LANE), jnp.float32).at[0, :OUTPUT_SIZE].set(p['bout'])

    return {'w0': w0, 'w1': w1, 'wout': wout, 'bout': bout}


@jax.jit
def rnn_forward(x, padded):
    """x: (B, T, INPUT_SIZE) float32 -> (B, OUTPUT_SIZE) float32."""
    B, T, I = x.shape
    BP = max(SUB, pl.cdiv(B, SUB) * SUB)     # batch rounded to sublane multiple

    # time-major, pad batch to BP, place x at lanes X_LO..X_LO+I-1.
    x_tm = jnp.transpose(x, (1, 0, 2))                               # (T, B, I)
    x_p = jnp.pad(x_tm, ((0, 0), (0, BP - B), (X_LO, LANE - X_LO - I)))
    # bake the constant-1 bias lanes into x (lanes B0_LANE and B1_LANE).
    lane_idx = lax.broadcasted_iota(jnp.int32, (1, 1, LANE), 2)
    bias_ones = ((lane_idx == B0_LANE) | (lane_idx == B1_LANE)).astype(jnp.float32)
    x_p = x_p + bias_ones                                            # (T, BP, 128)

    vmem_spec = pl.BlockSpec(memory_space=pltpu.MemorySpace.VMEM)
    out = pl.pallas_call(
        rnn_kernel,
        out_shape=jax.ShapeDtypeStruct((BP, LANE), jnp.float32),
        in_specs=[vmem_spec] * 5,
        out_specs=vmem_spec,
    )(x_p, padded['w0'], padded['w1'], padded['wout'], padded['bout'])

    return out[:B, :OUTPUT_SIZE]


def rnn_reference(x, p):
    """Pure-JAX reference matching torch nn.RNN(batch_first=True) semantics."""
    B, T, _ = x.shape
    h0 = jnp.zeros((B, HIDDEN_SIZE), jnp.float32)
    h1 = jnp.zeros((B, HIDDEN_SIZE), jnp.float32)
    for t in range(T):
        xt = x[:, t, :]
        h0 = jnp.tanh(xt @ p['wih0'] + h0 @ p['whh0'] + p['b0'])
        h1 = jnp.tanh(h0 @ p['wih1'] + h1 @ p['whh1'] + p['b1'])
    logits = h1 @ p['wout'] + p['bout']
    return 1.0 / (1.0 + jnp.exp(-logits))


def init_params(key):
    """Deterministic init mirroring torch's U(-1/sqrt(H), 1/sqrt(H)).
    Weights stored transposed relative to torch ((in, out)) so kernels compute
    x @ W; per-layer b_ih + b_hh are pre-summed (equivalent math)."""
    bound = 1.0 / np.sqrt(HIDDEN_SIZE)
    ks = jax.random.split(key, 12)
    u = lambda k, shp: jax.random.uniform(k, shp, jnp.float32, -bound, bound)
    return {
        'wih0': u(ks[0], (INPUT_SIZE, HIDDEN_SIZE)),
        'whh0': u(ks[1], (HIDDEN_SIZE, HIDDEN_SIZE)),
        'b0':   u(ks[2], (HIDDEN_SIZE,)) + u(ks[3], (HIDDEN_SIZE,)),
        'wih1': u(ks[4], (HIDDEN_SIZE, HIDDEN_SIZE)),
        'whh1': u(ks[5], (HIDDEN_SIZE, HIDDEN_SIZE)),
        'b1':   u(ks[6], (HIDDEN_SIZE,)) + u(ks[7], (HIDDEN_SIZE,)),
        'wout': u(ks[8], (HIDDEN_SIZE, OUTPUT_SIZE)),
        'bout': u(ks[9], (OUTPUT_SIZE,)),
    }


if __name__ == "__main__":
    key = jax.random.PRNGKey(0)
    pkey, xkey = jax.random.split(key)
    params = init_params(pkey)
    padded = prepare_padded_params(params)          # one-time weight prep

    B, T = 2, 8
    x = jax.random.normal(xkey, (B, T, INPUT_SIZE), jnp.float32)

    out = rnn_forward(x, padded)
    out = jax.block_until_ready(out)

    ref = rnn_reference(x, params)
    np.testing.assert_allclose(np.asarray(out), np.asarray(ref),
                               rtol=1e-5, atol=1e-5)
    assert out.shape == (B, OUTPUT_SIZE)
    print("KERNEL_OK")
</pallas_src>

<mosaic_0001>
module attributes {stable_mosaic.version = 11 : i64} {
  func.func @rnn_kernel(%arg0: memref<8x8x128xf32, #tpu.memory_space<vmem>>, %arg1: memref<128x128xf32, #tpu.memory_space<vmem>>, %arg2: memref<128x128xf32, #tpu.memory_space<vmem>>, %arg3: memref<128x128xf32, #tpu.memory_space<vmem>>, %arg4: memref<1x128xf32, #tpu.memory_space<vmem>>, %arg5: memref<8x128xf32, #tpu.memory_space<vmem>>) attributes {dimension_semantics = [], scalar_prefetch = 0 : i64, scratch_operands = 0 : i64, tpu.core_type = #tpu.core_type<tc>} {
    %cst = arith.constant 0.000000e+00 : f32
    %0 = vector.broadcast %cst : f32 to vector<8x128xf32>
    %c0_i32 = arith.constant 0 : i32
    %1 = arith.index_cast %c0_i32 : i32 to index
    %c0 = arith.constant 0 : index
    %c0_0 = arith.constant 0 : index
    %2 = vector.load %arg0[%1, %c0, %c0_0] : memref<8x8x128xf32, #tpu.memory_space<vmem>>, vector<1x8x128xf32>
    %3 = vector.shape_cast %2 : vector<1x8x128xf32> to vector<8x128xf32>
    %4 = arith.addf %0, %3 : vector<8x128xf32>
    %c0_1 = arith.constant 0 : index
    %c0_2 = arith.constant 0 : index
    %5 = vector.load %arg1[%c0_1, %c0_2] : memref<128x128xf32, #tpu.memory_space<vmem>>, vector<128x128xf32>
    %cst_3 = arith.constant dense<0.000000e+00> : vector<8x128xf32>
    %6 = tpu.matmul %4, %5, %cst_3 {dimension_numbers = #tpu.dot_dimension_numbers<[1], [0], [0], [1], [0, 0, 1, 1], [], []>} : vector<8x128xf32>, vector<128x128xf32>, vector<8x128xf32> -> vector<8x128xf32>
    %7 = math.tanh %6 : vector<8x128xf32>
    %8 = arith.addf %0, %3 : vector<8x128xf32>
    %9 = arith.addf %8, %7 : vector<8x128xf32>
    %c0_4 = arith.constant 0 : index
    %c0_5 = arith.constant 0 : index
    %10 = vector.load %arg2[%c0_4, %c0_5] : memref<128x128xf32, #tpu.memory_space<vmem>>, vector<128x128xf32>
    %cst_6 = arith.constant dense<0.000000e+00> : vector<8x128xf32>
    %11 = tpu.matmul %9, %10, %cst_6 {dimension_numbers = #tpu.dot_dimension_numbers<[1], [0], [0], [1], [0, 0, 1, 1], [], []>} : vector<8x128xf32>, vector<128x128xf32>, vector<8x128xf32> -> vector<8x128xf32>
    %12 = math.tanh %11 : vector<8x128xf32>
    %c1_i32 = arith.constant 1 : i32
    %13 = arith.index_cast %c1_i32 : i32 to index
    %c0_7 = arith.constant 0 : index
    %c0_8 = arith.constant 0 : index
    %14 = vector.load %arg0[%13, %c0_7, %c0_8] : memref<8x8x128xf32, #tpu.memory_space<vmem>>, vector<1x8x128xf32>
    %15 = vector.shape_cast %14 : vector<1x8x128xf32> to vector<8x128xf32>
    %16 = arith.addf %7, %15 : vector<8x128xf32>
    %c0_9 = arith.constant 0 : index
    %c0_10 = arith.constant 0 : index
    %17 = vector.load %arg1[%c0_9, %c0_10] : memref<128x128xf32, #tpu.memory_space<vmem>>, vector<128x128xf32>
    %cst_11 = arith.constant dense<0.000000e+00> : vector<8x128xf32>
    %18 = tpu.matmul %16, %17, %cst_11 {dimension_numbers = #tpu.dot_dimension_numbers<[1], [0], [0], [1], [0, 0, 1, 1], [], []>} : vector<8x128xf32>, vector<128x128xf32>, vector<8x128xf32> -> vector<8x128xf32>
    %19 = math.tanh %18 : vector<8x128xf32>
    %20 = arith.addf %12, %15 : vector<8x128xf32>
    %21 = arith.addf %20, %19 : vector<8x128xf32>
    %c0_12 = arith.constant 0 : index
    %c0_13 = arith.constant 0 : index
    %22 = vector.load %arg2[%c0_12, %c0_13] : memref<128x128xf32, #tpu.memory_space<vmem>>, vector<128x128xf32>
    %cst_14 = arith.constant dense<0.000000e+00> : vector<8x128xf32>
    %23 = tpu.matmul %21, %22, %cst_14 {dimension_numbers = #tpu.dot_dimension_numbers<[1], [0], [0], [1], [0, 0, 1, 1], [], []>} : vector<8x128xf32>, vector<128x128xf32>, vector<8x128xf32> -> vector<8x128xf32>
    %24 = math.tanh %23 : vector<8x128xf32>
    %c2_i32 = arith.constant 2 : i32
    %25 = arith.index_cast %c2_i32 : i32 to index
    %c0_15 = arith.constant 0 : index
    %c0_16 = arith.constant 0 : index
    %26 = vector.load %arg0[%25, %c0_15, %c0_16] : memref<8x8x128xf32, #tpu.memory_space<vmem>>, vector<1x8x128xf32>
    %27 = vector.shape_cast %26 : vector<1x8x128xf32> to vector<8x128xf32>
    %28 = arith.addf %19, %27 : vector<8x128xf32>
    %c0_17 = arith.constant 0 : index
    %c0_18 = arith.constant 0 : index
    %29 = vector.load %arg1[%c0_17, %c0_18] : memref<128x128xf32, #tpu.memory_space<vmem>>, vector<128x128xf32>
    %cst_19 = arith.constant dense<0.000000e+00> : vector<8x128xf32>
    %30 = tpu.matmul %28, %29, %cst_19 {dimension_numbers = #tpu.dot_dimension_numbers<[1], [0], [0], [1], [0, 0, 1, 1], [], []>} : vector<8x128xf32>, vector<128x128xf32>, vector<8x128xf32> -> vector<8x128xf32>
    %31 = math.tanh %30 : vector<8x128xf32>
    %32 = arith.addf %24, %27 : vector<8x128xf32>
    %33 = arith.addf %32, %31 : vector<8x128xf32>
    %c0_20 = arith.constant 0 : index
    %c0_21 = arith.constant 0 : index
    %34 = vector.load %arg2[%c0_20, %c0_21] : memref<128x128xf32, #tpu.memory_space<vmem>>, vector<128x128xf32>
    %cst_22 = arith.constant dense<0.000000e+00> : vector<8x128xf32>
    %35 = tpu.matmul %33, %34, %cst_22 {dimension_numbers = #tpu.dot_dimension_numbers<[1], [0], [0], [1], [0, 0, 1, 1], [], []>} : vector<8x128xf32>, vector<128x128xf32>, vector<8x128xf32> -> vector<8x128xf32>
    %36 = math.tanh %35 : vector<8x128xf32>
    %c3_i32 = arith.constant 3 : i32
    %37 = arith.index_cast %c3_i32 : i32 to index
    %c0_23 = arith.constant 0 : index
    %c0_24 = arith.constant 0 : index
    %38 = vector.load %arg0[%37, %c0_23, %c0_24] : memref<8x8x128xf32, #tpu.memory_space<vmem>>, vector<1x8x128xf32>
    %39 = vector.shape_cast %38 : vector<1x8x128xf32> to vector<8x128xf32>
    %40 = arith.addf %31, %39 : vector<8x128xf32>
    %c0_25 = arith.constant 0 : index
    %c0_26 = arith.constant 0 : index
    %41 = vector.load %arg1[%c0_25, %c0_26] : memref<128x128xf32, #tpu.memory_space<vmem>>, vector<128x128xf32>
    %cst_27 = arith.constant dense<0.000000e+00> : vector<8x128xf32>
    %42 = tpu.matmul %40, %41, %cst_27 {dimension_numbers = #tpu.dot_dimension_numbers<[1], [0], [0], [1], [0, 0, 1, 1], [], []>} : vector<8x128xf32>, vector<128x128xf32>, vector<8x128xf32> -> vector<8x128xf32>
    %43 = math.tanh %42 : vector<8x128xf32>
    %44 = arith.addf %36, %39 : vector<8x128xf32>
    %45 = arith.addf %44, %43 : vector<8x128xf32>
    %c0_28 = arith.constant 0 : index
    %c0_29 = arith.constant 0 : index
    %46 = vector.load %arg2[%c0_28, %c0_29] : memref<128x128xf32, #tpu.memory_space<vmem>>, vector<128x128xf32>
    %cst_30 = arith.constant dense<0.000000e+00> : vector<8x128xf32>
    %47 = tpu.matmul %45, %46, %cst_30 {dimension_numbers = #tpu.dot_dimension_numbers<[1], [0], [0], [1], [0, 0, 1, 1], [], []>} : vector<8x128xf32>, vector<128x128xf32>, vector<8x128xf32> -> vector<8x128xf32>
    %48 = math.tanh %47 : vector<8x128xf32>
    %c4_i32 = arith.constant 4 : i32
    %49 = arith.index_cast %c4_i32 : i32 to index
    %c0_31 = arith.constant 0 : index
    %c0_32 = arith.constant 0 : index
    %50 = vector.load %arg0[%49, %c0_31, %c0_32] : memref<8x8x128xf32, #tpu.memory_space<vmem>>, vector<1x8x128xf32>
    %51 = vector.shape_cast %50 : vector<1x8x128xf32> to vector<8x128xf32>
    %52 = arith.addf %43, %51 : vector<8x128xf32>
    %c0_33 = arith.constant 0 : index
    %c0_34 = arith.constant 0 : index
    %53 = vector.load %arg1[%c0_33, %c0_34] : memref<128x128xf32, #tpu.memory_space<vmem>>, vector<128x128xf32>
    %cst_35 = arith.constant dense<0.000000e+00> : vector<8x128xf32>
    %54 = tpu.matmul %52, %53, %cst_35 {dimension_numbers = #tpu.dot_dimension_numbers<[1], [0], [0], [1], [0, 0, 1, 1], [], []>} : vector<8x128xf32>, vector<128x128xf32>, vector<8x128xf32> -> vector<8x128xf32>
    %55 = math.tanh %54 : vector<8x128xf32>
    %56 = arith.addf %48, %51 : vector<8x128xf32>
    %57 = arith.addf %56, %55 : vector<8x128xf32>
    %c0_36 = arith.constant 0 : index
    %c0_37 = arith.constant 0 : index
    %58 = vector.load %arg2[%c0_36, %c0_37] : memref<128x128xf32, #tpu.memory_space<vmem>>, vector<128x128xf32>
    %cst_38 = arith.constant dense<0.000000e+00> : vector<8x128xf32>
    %59 = tpu.matmul %57, %58, %cst_38 {dimension_numbers = #tpu.dot_dimension_numbers<[1], [0], [0], [1], [0, 0, 1, 1], [], []>} : vector<8x128xf32>, vector<128x128xf32>, vector<8x128xf32> -> vector<8x128xf32>
    %60 = math.tanh %59 : vector<8x128xf32>
    %c5_i32 = arith.constant 5 : i32
    %61 = arith.index_cast %c5_i32 : i32 to index
    %c0_39 = arith.constant 0 : index
    %c0_40 = arith.constant 0 : index
    %62 = vector.load %arg0[%61, %c0_39, %c0_40] : memref<8x8x128xf32, #tpu.memory_space<vmem>>, vector<1x8x128xf32>
    %63 = vector.shape_cast %62 : vector<1x8x128xf32> to vector<8x128xf32>
    %64 = arith.addf %55, %63 : vector<8x128xf32>
    %c0_41 = arith.constant 0 : index
    %c0_42 = arith.constant 0 : index
    %65 = vector.load %arg1[%c0_41, %c0_42] : memref<128x128xf32, #tpu.memory_space<vmem>>, vector<128x128xf32>
    %cst_43 = arith.constant dense<0.000000e+00> : vector<8x128xf32>
    %66 = tpu.matmul %64, %65, %cst_43 {dimension_numbers = #tpu.dot_dimension_numbers<[1], [0], [0], [1], [0, 0, 1, 1], [], []>} : vector<8x128xf32>, vector<128x128xf32>, vector<8x128xf32> -> vector<8x128xf32>
    %67 = math.tanh %66 : vector<8x128xf32>
    %68 = arith.addf %60, %63 : vector<8x128xf32>
    %69 = arith.addf %68, %67 : vector<8x128xf32>
    %c0_44 = arith.constant 0 : index
    %c0_45 = arith.constant 0 : index
    %70 = vector.load %arg2[%c0_44, %c0_45] : memref<128x128xf32, #tpu.memory_space<vmem>>, vector<128x128xf32>
    %cst_46 = arith.constant dense<0.000000e+00> : vector<8x128xf32>
    %71 = tpu.matmul %69, %70, %cst_46 {dimension_numbers = #tpu.dot_dimension_numbers<[1], [0], [0], [1], [0, 0, 1, 1], [], []>} : vector<8x128xf32>, vector<128x128xf32>, vector<8x128xf32> -> vector<8x128xf32>
    %72 = math.tanh %71 : vector<8x128xf32>
    %c6_i32 = arith.constant 6 : i32
    %73 = arith.index_cast %c6_i32 : i32 to index
    %c0_47 = arith.constant 0 : index
    %c0_48 = arith.constant 0 : index
    %74 = vector.load %arg0[%73, %c0_47, %c0_48] : memref<8x8x128xf32, #tpu.memory_space<vmem>>, vector<1x8x128xf32>
    %75 = vector.shape_cast %74 : vector<1x8x128xf32> to vector<8x128xf32>
    %76 = arith.addf %67, %75 : vector<8x128xf32>
    %c0_49 = arith.constant 0 : index
    %c0_50 = arith.constant 0 : index
    %77 = vector.load %arg1[%c0_49, %c0_50] : memref<128x128xf32, #tpu.memory_space<vmem>>, vector<128x128xf32>
    %cst_51 = arith.constant dense<0.000000e+00> : vector<8x128xf32>
    %78 = tpu.matmul %76, %77, %cst_51 {dimension_numbers = #tpu.dot_dimension_numbers<[1], [0], [0], [1], [0, 0, 1, 1], [], []>} : vector<8x128xf32>, vector<128x128xf32>, vector<8x128xf32> -> vector<8x128xf32>
    %79 = math.tanh %78 : vector<8x128xf32>
    %80 = arith.addf %72, %75 : vector<8x128xf32>
    %81 = arith.addf %80, %79 : vector<8x128xf32>
    %c0_52 = arith.constant 0 : index
    %c0_53 = arith.constant 0 : index
    %82 = vector.load %arg2[%c0_52, %c0_53] : memref<128x128xf32, #tpu.memory_space<vmem>>, vector<128x128xf32>
    %cst_54 = arith.constant dense<0.000000e+00> : vector<8x128xf32>
    %83 = tpu.matmul %81, %82, %cst_54 {dimension_numbers = #tpu.dot_dimension_numbers<[1], [0], [0], [1], [0, 0, 1, 1], [], []>} : vector<8x128xf32>, vector<128x128xf32>, vector<8x128xf32> -> vector<8x128xf32>
    %84 = math.tanh %83 : vector<8x128xf32>
    %c7_i32 = arith.constant 7 : i32
    %85 = arith.index_cast %c7_i32 : i32 to index
    %c0_55 = arith.constant 0 : index
    %c0_56 = arith.constant 0 : index
    %86 = vector.load %arg0[%85, %c0_55, %c0_56] : memref<8x8x128xf32, #tpu.memory_space<vmem>>, vector<1x8x128xf32>
    %87 = vector.shape_cast %86 : vector<1x8x128xf32> to vector<8x128xf32>
    %88 = arith.addf %79, %87 : vector<8x128xf32>
    %c0_57 = arith.constant 0 : index
    %c0_58 = arith.constant 0 : index
    %89 = vector.load %arg1[%c0_57, %c0_58] : memref<128x128xf32, #tpu.memory_space<vmem>>, vector<128x128xf32>
    %cst_59 = arith.constant dense<0.000000e+00> : vector<8x128xf32>
    %90 = tpu.matmul %88, %89, %cst_59 {dimension_numbers = #tpu.dot_dimension_numbers<[1], [0], [0], [1], [0, 0, 1, 1], [], []>} : vector<8x128xf32>, vector<128x128xf32>, vector<8x128xf32> -> vector<8x128xf32>
    %91 = math.tanh %90 : vector<8x128xf32>
    %92 = arith.addf %84, %87 : vector<8x128xf32>
    %93 = arith.addf %92, %91 : vector<8x128xf32>
    %c0_60 = arith.constant 0 : index
    %c0_61 = arith.constant 0 : index
    %94 = vector.load %arg2[%c0_60, %c0_61] : memref<128x128xf32, #tpu.memory_space<vmem>>, vector<128x128xf32>
    %cst_62 = arith.constant dense<0.000000e+00> : vector<8x128xf32>
    %95 = tpu.matmul %93, %94, %cst_62 {dimension_numbers = #tpu.dot_dimension_numbers<[1], [0], [0], [1], [0, 0, 1, 1], [], []>} : vector<8x128xf32>, vector<128x128xf32>, vector<8x128xf32> -> vector<8x128xf32>
    %96 = math.tanh %95 : vector<8x128xf32>
    %c8_i32 = arith.constant 8 : i32
    %c0_63 = arith.constant 0 : index
    %c0_64 = arith.constant 0 : index
    %97 = vector.load %arg3[%c0_63, %c0_64] : memref<128x128xf32, #tpu.memory_space<vmem>>, vector<128x128xf32>
    %cst_65 = arith.constant dense<0.000000e+00> : vector<8x128xf32>
    %98 = tpu.matmul %96, %97, %cst_65 {dimension_numbers = #tpu.dot_dimension_numbers<[1], [0], [0], [1], [0, 0, 1, 1], [], []>} : vector<8x128xf32>, vector<128x128xf32>, vector<8x128xf32> -> vector<8x128xf32>
    %c0_66 = arith.constant 0 : index
    %c0_67 = arith.constant 0 : index
    %99 = vector.load %arg4[%c0_66, %c0_67] : memref<1x128xf32, #tpu.memory_space<vmem>>, vector<1x128xf32>
    %100 = vector.broadcast %99 : vector<1x128xf32> to vector<8x128xf32>
    %101 = arith.addf %98, %100 : vector<8x128xf32>
    %102 = arith.negf %101 : vector<8x128xf32>
    %103 = math.exp %102 : vector<8x128xf32>
    %cst_68 = arith.constant 1.000000e+00 : f32
    %104 = vector.broadcast %cst_68 : f32 to vector<8x128xf32>
    %105 = arith.addf %104, %103 : vector<8x128xf32>
    %106 = arith.divf %104, %105 : vector<8x128xf32>
    %c0_69 = arith.constant 0 : index
    %c0_70 = arith.constant 0 : index
    %107 = vector.load %arg5[%c0_69, %c0_70] : memref<8x128xf32, #tpu.memory_space<vmem>>, vector<8x128xf32>
    tpu.vector_store %arg5[%c0_69, %c0_70], %106 {strides = array<i32>} : memref<8x128xf32, #tpu.memory_space<vmem>>, vector<8x128xf32>,
    return
  }
}

</mosaic_0001>

<bundles_post_ra>
// kernel: rnn_forward.1
= control target key start
LH: loop header
LB: loop body
LE: loop exit
PB: predicated region body
PF: predicated region fallthrough
CT: control target
= control target key end

     0   :  { %10 = vsyncpa [#allocation3], 0  ;;  %s1063_s0 = inlined_call_operand.vmem [shape: f32[8,8,128], index: 0, kind: input, shape index: {}]   ;;  %s1064_s1 = inlined_call_operand.hbm [shape: f32[128,128], index: 1, kind: input, shape index: {}]   ;;  %s1065_s2 = inlined_call_operand.hbm [shape: f32[128,128], index: 2, kind: input, shape index: {}]   ;;  %s1066_s3 = inlined_call_operand.hbm [shape: f32[128,128], index: 3, kind: input, shape index: {}]   ;;  %s1067_s4 = inlined_call_operand.vmem [shape: f32[1,128], index: 4, kind: input, shape index: {}]   ;;  %s1068_s5 = inlined_call_operand.vmem [shape: f32[8,128], index: 5, kind: output, shape index: {}]  }
   0x1   :  { %11 = vsyncpa [#allocation5], 0  ;;  %s31_s20 = sshll.u32 %s1065_s2, 4  ;;  %s665_s21 = smov [#allocation4]   ;;  %s32_s20 = int_to_ptr.hbm [resolvable:$true] %s31_s20 }
   0x2   :  { %s33_s22 = sshll.u32 %s665_s21, 4  ;;  %s18_s25 = sshll.u32 %s1064_s1, 4  ;;  %s34_s22 = int_to_ptr.vmem [resolvable:$true] %s33_s22  ;;  %s19_s25 = int_to_ptr.hbm [resolvable:$true] %s18_s25 }
   0x3   :  { %s666_s26 = smov 128   ;;  %s667_s27 = smov 8  }
   0x4   :  { %39 = dma.hbm_to_vmem [thread:$0]  %s32_s20, 2048, %s34_s22, [#allocation5], %s666_s26, %s666_s26, %s667_s27  }
   0x5   :  { %s668_s28 = smov [#allocation2]   ;;  %s44_s7 = sshll.u32 %s1066_s3, 4  ;;  %s45_s7 = int_to_ptr.hbm [resolvable:$true] %s44_s7 }
   0x6   :  { %s20_s29 = sshll.u32 %s668_s28, 4  ;;  %s669_s2 = smov [#allocation6]   ;;  %s21_s29 = int_to_ptr.vmem [resolvable:$true] %s20_s29 }
   0x7   :  { %26 = dma.hbm_to_vmem [thread:$0]  %s19_s25, 2048, %s21_s29, [#allocation3], %s666_s26, %s666_s26, %s667_s27  }
   0x8   :  { %s46_s8 = sshll.u32 %s669_s2, 4  ;;  %s47_s8 = int_to_ptr.vmem [resolvable:$true] %s46_s8 }
   0x9   :  { %52 = dma.hbm_to_vmem [thread:$0]  %s45_s7, 2048, %s47_s8, [#allocation5], %s666_s26, %s666_s26, %s667_s27  }
   0xa   :  { %661 = dma.done.wait [#allocation3], 2048  }
   0xb   :  { %662 = vsyncadd [#allocation3], 4294965248 }
   0xc   :  { %663 = dma.done.wait [#allocation5], 4096  }
   0xd   :  { %664 = vsyncadd [#allocation5], 4294963200  ;;  %v709_v0 = vld [vmem:[#allocation2 + $0x78] sm:$0xff]  ;;  %v711_v1 = vld [vmem:[#allocation2 + $0x70] sm:$0xff] }
   0xe   :  { %85 = vmatpush.msra.mxu0 %v709_v0  ;;  %147 = vmatpush.msra.mxu2 %v709_v0  ;;  %v715_v2 = vld [vmem:[#allocation2 + $0x68] sm:$0xff]  ;;  %v719_v3 = vld [vmem:[#allocation2 + $0x60] sm:$0xff]  ;;  %v722_v4 = vld [vmem:[#allocation4 + $0x78] sm:$0xff] }
   0xf   :  { %v725_v5 = vld [vmem:[#allocation2 + $0x58] sm:$0xff]  ;;  %123 = vmatpush.msra.mxu1 %v722_v4  ;;  %v728_v6 = vld [vmem:[#allocation4 + $0x70] sm:$0xff]  ;;  %170 = vmatpush.msra.mxu3 %v722_v4  ;;  %v732_v7 = vld [vmem:[#allocation4 + $0x68] sm:$0xff] }
  0x10   :  { %86 = vmatpush.msra.mxu0 %v711_v1  ;;  %148 = vmatpush.msra.mxu2 %v711_v1  ;;  %v735_v8 = vld [vmem:[#allocation2 + $0x50] sm:$0xff]  ;;  %v740_v9 = vld [vmem:[#allocation4 + $0x60] sm:$0xff]  ;;  %v743_v10 = vld [vmem:[#allocation2 + $0x48] sm:$0xff] }
  0x11   :  { %124 = vmatpush.msra.mxu1 %v728_v6  ;;  %171 = vmatpush.msra.mxu3 %v728_v6  ;;  %v748_v11 = vld [vmem:[#allocation4 + $0x58] sm:$0xff]  ;;  %v751_v12 = vld [vmem:[#allocation2 + $0x40] sm:$0xff]  ;;  %v756_v13 = vld [vmem:[#allocation4 + $0x50] sm:$0xff] }
  0x12   :  { %87 = vmatpush.msra.mxu0 %v715_v2  ;;  %149 = vmatpush.msra.mxu2 %v715_v2  ;;  %v759_v14 = vld [vmem:[#allocation2 + $0x38] sm:$0xff]  ;;  %v764_v15 = vld [vmem:[#allocation4 + $0x48] sm:$0xff]  ;;  %v767_v16 = vld [vmem:[#allocation2 + $0x30] sm:$0xff] }
  0x13   :  { %125 = vmatpush.msra.mxu1 %v732_v7  ;;  %172 = vmatpush.msra.mxu3 %v732_v7  ;;  %v772_v17 = vld [vmem:[#allocation4 + $0x40] sm:$0xff]  ;;  %v775_v18 = vld [vmem:[#allocation2 + $0x28] sm:$0xff]  ;;  %v780_v19 = vld [vmem:[#allocation4 + $0x38] sm:$0xff] }
  0x14   :  { %88 = vmatpush.msra.mxu0 %v719_v3  ;;  %150 = vmatpush.msra.mxu2 %v719_v3  ;;  %v783_v20 = vld [vmem:[#allocation2 + $0x20] sm:$0xff]  ;;  %v788_v21 = vld [vmem:[#allocation4 + $0x30] sm:$0xff]  ;;  %v791_v22 = vld [vmem:[#allocation2 + $0x18] sm:$0xff] }
  0x15   :  { %126 = vmatpush.msra.mxu1 %v740_v9  ;;  %173 = vmatpush.msra.mxu3 %v740_v9  ;;  %v796_v23 = vld [vmem:[#allocation4 + $0x28] sm:$0xff]  ;;  %v799_v24 = vld [vmem:[#allocation2 + $0x10] sm:$0xff]  ;;  %v811_v26 = vld [vmem:[#allocation2] sm:$0xff] }
  0x16   :  { %89 = vmatpush.msra.mxu0 %v725_v5  ;;  %151 = vmatpush.msra.mxu2 %v725_v5  ;;  %v805_v25 = vld [vmem:[#allocation2 + $0x8] sm:$0xff]  ;;  %v817_v27 = vld [vmem:[%s1063_s0] sm:$0xff]  ;;  %v874_v29 = vld [vmem:[#allocation4 + $0x18] sm:$0xff] }
  0x17   :  { %127 = vmatpush.msra.mxu1 %v748_v11  ;;  %174 = vmatpush.msra.mxu3 %v748_v11  ;;  %v871_v28 = vld [vmem:[#allocation4 + $0x20] sm:$0xff]  ;;  %v877_v30 = vld [vmem:[#allocation4 + $0x10] sm:$0xff]  ;;  %v881_v31 = vld [vmem:[#allocation4 + $0x8] sm:$0xff] }
  0x18   :  { %90 = vmatpush.msra.mxu0 %v735_v8  ;;  %152 = vmatpush.msra.mxu2 %v735_v8  ;;  %v885_v32 = vld [vmem:[#allocation4] sm:$0xff]  ;;  %v539_v34 = vld [vmem:[%s1063_s0 + $0x8] sm:$0xff]  ;;  %v540_v41 = vld [vmem:[%s1063_s0 + $0x10] sm:$0xff] }
  0x19   :  { %128 = vmatpush.msra.mxu1 %v756_v13  ;;  %175 = vmatpush.msra.mxu3 %v756_v13  ;;  %v541_v47 = vld [vmem:[%s1063_s0 + $0x18] sm:$0xff]  ;;  %v542_v56 = vld [vmem:[%s1063_s0 + $0x20] sm:$0xff]  ;;  %v543_v63 = vld [vmem:[%s1063_s0 + $0x28] sm:$0xff] }
  0x1a   :  { %91 = vmatpush.msra.mxu0 %v743_v10  ;;  %153 = vmatpush.msra.mxu2 %v743_v10 }
  0x1b   :  { %129 = vmatpush.msra.mxu1 %v764_v15  ;;  %176 = vmatpush.msra.mxu3 %v764_v15 }
  0x1c   :  { %92 = vmatpush.msra.mxu0 %v751_v12  ;;  %154 = vmatpush.msra.mxu2 %v751_v12 }
  0x1d   :  { %130 = vmatpush.msra.mxu1 %v772_v17  ;;  %177 = vmatpush.msra.mxu3 %v772_v17 }
  0x1e   :  { %93 = vmatpush.msra.mxu0 %v759_v14  ;;  %155 = vmatpush.msra.mxu2 %v759_v14 }
  0x1f   :  { %131 = vmatpush.msra.mxu1 %v780_v19  ;;  %178 = vmatpush.msra.mxu3 %v780_v19 }
  0x20   :  { %94 = vmatpush.msra.mxu0 %v767_v16  ;;  %156 = vmatpush.msra.mxu2 %v767_v16 }
  0x21   :  { %132 = vmatpush.msra.mxu1 %v788_v21  ;;  %179 = vmatpush.msra.mxu3 %v788_v21 }
  0x22   :  { %95 = vmatpush.msra.mxu0 %v775_v18  ;;  %157 = vmatpush.msra.mxu2 %v775_v18 }
  0x23   :  { %133 = vmatpush.msra.mxu1 %v796_v23  ;;  %180 = vmatpush.msra.mxu3 %v796_v23 }
  0x24   :  { %96 = vmatpush.msra.mxu0 %v783_v20  ;;  %158 = vmatpush.msra.mxu2 %v783_v20 }
  0x25   :  { %134 = vmatpush.msra.mxu1 %v871_v28  ;;  %181 = vmatpush.msra.mxu3 %v871_v28 }
  0x26   :  { %97 = vmatpush.msra.mxu0 %v791_v22  ;;  %159 = vmatpush.msra.mxu2 %v791_v22 }
  0x27   :  { %135 = vmatpush.msra.mxu1 %v874_v29  ;;  %182 = vmatpush.msra.mxu3 %v874_v29 }
  0x28   :  { %98 = vmatpush.msra.mxu0 %v799_v24  ;;  %160 = vmatpush.msra.mxu2 %v799_v24 }
  0x29   :  { %136 = vmatpush.msra.mxu1 %v877_v30  ;;  %183 = vmatpush.msra.mxu3 %v877_v30 }
  0x2a   :  { %99 = vmatpush.msra.mxu0 %v805_v25  ;;  %161 = vmatpush.msra.mxu2 %v805_v25 }
  0x2b   :  { %137 = vmatpush.msra.mxu1 %v881_v31  ;;  %184 = vmatpush.msra.mxu3 %v881_v31 }
  0x2c   :  { %100 = vmatpush.msra.mxu0 %v811_v26  ;;  %162 = vmatpush.msra.mxu2 %v811_v26 }
  0x2d   :  { %101 = vmatmul.f32.vlgmr.msra.gmra.mxu0 %v817_v27  ;;  %138 = vmatpush.msra.mxu1 %v885_v32 }
  0x2e   :  { %241 = vmatpush.msrb.mxu2 %v709_v0  ;;  %194 = vmatpush.msrb.mxu0 %v709_v0 }
  0x2f   :  { %185 = vmatpush.msra.mxu3 %v885_v32  ;;  %217 = vmatpush.msrb.mxu1 %v722_v4 }
  0x30   :  { %242 = vmatpush.msrb.mxu2 %v711_v1  ;;  %195 = vmatpush.msrb.mxu0 %v711_v1 }
  0x31   :  { %264 = vmatpush.msrb.mxu3 %v722_v4  ;;  %218 = vmatpush.msrb.mxu1 %v728_v6 }
  0x32   :  { %243 = vmatpush.msrb.mxu2 %v715_v2  ;;  %196 = vmatpush.msrb.mxu0 %v715_v2 }
  0x33   :  { %265 = vmatpush.msrb.mxu3 %v728_v6  ;;  %219 = vmatpush.msrb.mxu1 %v732_v7 }
  0x34   :  { %244 = vmatpush.msrb.mxu2 %v719_v3  ;;  %197 = vmatpush.msrb.mxu0 %v719_v3 }
  0x35   :  { %266 = vmatpush.msrb.mxu3 %v732_v7  ;;  %220 = vmatpush.msrb.mxu1 %v740_v9 }
  0x36   :  { %245 = vmatpush.msrb.mxu2 %v725_v5  ;;  %198 = vmatpush.msrb.mxu0 %v725_v5 }
  0x37   :  { %267 = vmatpush.msrb.mxu3 %v740_v9  ;;  %221 = vmatpush.msrb.mxu1 %v748_v11 }
  0x38   :  { %246 = vmatpush.msrb.mxu2 %v735_v8  ;;  %199 = vmatpush.msrb.mxu0 %v735_v8 }
  0x39   :  { %268 = vmatpush.msrb.mxu3 %v748_v11  ;;  %222 = vmatpush.msrb.mxu1 %v756_v13 }
  0x3a   :  { %247 = vmatpush.msrb.mxu2 %v743_v10  ;;  %200 = vmatpush.msrb.mxu0 %v743_v10 }
  0x3b   :  { %269 = vmatpush.msrb.mxu3 %v756_v13  ;;  %223 = vmatpush.msrb.mxu1 %v764_v15 }
  0x3c   :  { %248 = vmatpush.msrb.mxu2 %v751_v12  ;;  %201 = vmatpush.msrb.mxu0 %v751_v12 }
  0x3d   :  { %270 = vmatpush.msrb.mxu3 %v764_v15  ;;  %224 = vmatpush.msrb.mxu1 %v772_v17 }
  0x3e   :  { %249 = vmatpush.msrb.mxu2 %v759_v14  ;;  %202 = vmatpush.msrb.mxu0 %v759_v14 }
  0x3f   :  { %271 = vmatpush.msrb.mxu3 %v772_v17  ;;  %225 = vmatpush.msrb.mxu1 %v780_v19 }
  0x40   :  { %250 = vmatpush.msrb.mxu2 %v767_v16  ;;  %203 = vmatpush.msrb.mxu0 %v767_v16 }
  0x41   :  { %272 = vmatpush.msrb.mxu3 %v780_v19  ;;  %226 = vmatpush.msrb.mxu1 %v788_v21 }
  0x42   :  { %251 = vmatpush.msrb.mxu2 %v775_v18  ;;  %204 = vmatpush.msrb.mxu0 %v775_v18 }
  0x43   :  { %273 = vmatpush.msrb.mxu3 %v788_v21  ;;  %227 = vmatpush.msrb.mxu1 %v796_v23 }
  0x44   :  { %252 = vmatpush.msrb.mxu2 %v783_v20  ;;  %205 = vmatpush.msrb.mxu0 %v783_v20 }
  0x45   :  { %274 = vmatpush.msrb.mxu3 %v796_v23  ;;  %228 = vmatpush.msrb.mxu1 %v871_v28 }
  0x46   :  { %253 = vmatpush.msrb.mxu2 %v791_v22  ;;  %206 = vmatpush.msrb.mxu0 %v791_v22 }
  0x47   :  { %275 = vmatpush.msrb.mxu3 %v871_v28  ;;  %229 = vmatpush.msrb.mxu1 %v874_v29 }
  0x48   :  { %254 = vmatpush.msrb.mxu2 %v799_v24  ;;  %207 = vmatpush.msrb.mxu0 %v799_v24 }
  0x49   :  { %276 = vmatpush.msrb.mxu3 %v874_v29  ;;  %230 = vmatpush.msrb.mxu1 %v877_v30 }
  0x4a   :  { %255 = vmatpush.msrb.mxu2 %v805_v25  ;;  %208 = vmatpush.msrb.mxu0 %v805_v25 }
  0x4b   :  { %277 = vmatpush.msrb.mxu3 %v877_v30  ;;  %231 = vmatpush.msrb.mxu1 %v881_v31 }
  0x4c   :  { %256 = vmatpush.msrb.mxu2 %v811_v26  ;;  %209 = vmatpush.msrb.mxu0 %v811_v26 }
  0x4d   :  { %278 = vmatpush.msrb.mxu3 %v881_v31  ;;  %232 = vmatpush.msrb.mxu1 %v885_v32 }
  0x4e   :  { %288 = vmatpush.msra.mxu0 %v709_v0 }
  0x4f   :  { %279 = vmatpush.msrb.mxu3 %v885_v32 }
  0x50   :  { %289 = vmatpush.msra.mxu0 %v711_v1 }
  0x52   :  { %290 = vmatpush.msra.mxu0 %v715_v2 }
  0x54   :  { %291 = vmatpush.msra.mxu0 %v719_v3 }
  0x56   :  { %292 = vmatpush.msra.mxu0 %v725_v5 }
  0x58   :  { %293 = vmatpush.msra.mxu0 %v735_v8 }
  0x5a   :  { %294 = vmatpush.msra.mxu0 %v743_v10 }
  0x5c   :  { %295 = vmatpush.msra.mxu0 %v751_v12 }
  0x5e   :  { %296 = vmatpush.msra.mxu0 %v759_v14 }
  0x60   :  { %297 = vmatpush.msra.mxu0 %v767_v16 }
  0x62   :  { %298 = vmatpush.msra.mxu0 %v775_v18 }
  0x64   :  { %299 = vmatpush.msra.mxu0 %v783_v20 }
  0x66   :  { %300 = vmatpush.msra.mxu0 %v791_v22 }
  0x68   :  { %301 = vmatpush.msra.mxu0 %v799_v24 }
  0x6a   :  { %302 = vmatpush.msra.mxu0 %v805_v25 }
  0x6c   :  { %303 = vmatpush.msra.mxu0 %v811_v26 }
  0xaa   :  { %v102_v33 = vpop.f32.mrf.mxu0 }
  0xab   :  { %553 = vtanh.f32 %v102_v33 }
  0xb1   :  { %v554_v35 = vpop.eup %553 }
  0xb2   :  { %v106_v36 = vadd.f32 %v554_v35, %v817_v27  ;;  %v146_v37 = vadd.f32 %v554_v35, %v539_v34  ;;  %v483_v27 = vld [vmem:[#allocation6 + $0x50] sm:$0xff]  ;;  %v477_v35 = vld [vmem:[#allocation6 + $0x20] sm:$0xff] }
  0xb4   :  { %139 = vmatmul.f32.vlgmr.msra.gmra.mxu1 %v106_v36  ;;  %163 = vmatmul.f32.vlgmr.msra.gmra.mxu2 %v146_v37 }
  0xb5   :  { %335 = vmatpush.msra.mxu2 %v709_v0  ;;  %311 = vmatpush.msra.mxu1 %v722_v4 }
  0xb7   :  { %336 = vmatpush.msra.mxu2 %v711_v1  ;;  %312 = vmatpush.msra.mxu1 %v728_v6 }
  0xb9   :  { %337 = vmatpush.msra.mxu2 %v715_v2  ;;  %313 = vmatpush.msra.mxu1 %v732_v7 }
  0xbb   :  { %338 = vmatpush.msra.mxu2 %v719_v3  ;;  %314 = vmatpush.msra.mxu1 %v740_v9 }
  0xbd   :  { %339 = vmatpush.msra.mxu2 %v725_v5  ;;  %315 = vmatpush.msra.mxu1 %v748_v11 }
  0xbf   :  { %340 = vmatpush.msra.mxu2 %v735_v8  ;;  %316 = vmatpush.msra.mxu1 %v756_v13 }
  0xc1   :  { %341 = vmatpush.msra.mxu2 %v743_v10  ;;  %317 = vmatpush.msra.mxu1 %v764_v15 }
  0xc3   :  { %342 = vmatpush.msra.mxu2 %v751_v12  ;;  %318 = vmatpush.msra.mxu1 %v772_v17 }
  0xc5   :  { %343 = vmatpush.msra.mxu2 %v759_v14  ;;  %319 = vmatpush.msra.mxu1 %v780_v19 }
  0xc7   :  { %344 = vmatpush.msra.mxu2 %v767_v16  ;;  %320 = vmatpush.msra.mxu1 %v788_v21 }
  0xc9   :  { %345 = vmatpush.msra.mxu2 %v775_v18  ;;  %321 = vmatpush.msra.mxu1 %v796_v23 }
  0xcb   :  { %346 = vmatpush.msra.mxu2 %v783_v20  ;;  %322 = vmatpush.msra.mxu1 %v871_v28 }
  0xcd   :  { %347 = vmatpush.msra.mxu2 %v791_v22  ;;  %323 = vmatpush.msra.mxu1 %v874_v29 }
  0xcf   :  { %348 = vmatpush.msra.mxu2 %v799_v24  ;;  %324 = vmatpush.msra.mxu1 %v877_v30 }
  0xd1   :  { %349 = vmatpush.msra.mxu2 %v805_v25  ;;  %325 = vmatpush.msra.mxu1 %v881_v31 }
  0xd3   :  { %350 = vmatpush.msra.mxu2 %v811_v26  ;;  %326 = vmatpush.msra.mxu1 %v885_v32 }
 0x131   :  { %v140_v38 = vpop.f32.mrf.mxu1 }
 0x132   :  { %555 = vtanh.f32 %v140_v38 }
 0x137   :  { %v164_v39 = vpop.f32.mrf.mxu2 }
 0x138   :  { %557 = vtanh.f32 %v164_v39  ;;  %v556_v40 = vpop.eup %555 }
 0x139   :  { %v168_v42 = vadd.f32 %v556_v40, %v539_v34  ;;  %v476_v40 = vld [vmem:[#allocation6 + $0x18] sm:$0xff] }
 0x13e   :  { %v558_v43 = vpop.eup %557 }
 0x13f   :  { %v169_v44 = vadd.f32 %v558_v43, %v168_v42  ;;  %v193_v45 = vadd.f32 %v558_v43, %v540_v41  ;;  %v474_v42 = vld [vmem:[#allocation6 + $0x8] sm:$0xff]  ;;  %v473_v43 = vld [vmem:[#allocation6] sm:$0xff] }
 0x141   :  { %186 = vmatmul.f32.vlgmr.msra.gmra.mxu3 %v169_v44  ;;  %210 = vmatmul.f32.vlgmr.msrb.gmra.mxu0 %v193_v45 }
 0x142   :  { %382 = vmatpush.msrb.mxu0 %v709_v0  ;;  %358 = vmatpush.msra.mxu3 %v722_v4 }
 0x144   :  { %383 = vmatpush.msrb.mxu0 %v711_v1  ;;  %359 = vmatpush.msra.mxu3 %v728_v6 }
 0x146   :  { %384 = vmatpush.msrb.mxu0 %v715_v2  ;;  %360 = vmatpush.msra.mxu3 %v732_v7 }
 0x148   :  { %385 = vmatpush.msrb.mxu0 %v719_v3  ;;  %361 = vmatpush.msra.mxu3 %v740_v9 }
 0x14a   :  { %386 = vmatpush.msrb.mxu0 %v725_v5  ;;  %362 = vmatpush.msra.mxu3 %v748_v11 }
 0x14c   :  { %387 = vmatpush.msrb.mxu0 %v735_v8  ;;  %363 = vmatpush.msra.mxu3 %v756_v13 }
 0x14e   :  { %388 = vmatpush.msrb.mxu0 %v743_v10  ;;  %364 = vmatpush.msra.mxu3 %v764_v15 }
 0x150   :  { %389 = vmatpush.msrb.mxu0 %v751_v12  ;;  %365 = vmatpush.msra.mxu3 %v772_v17 }
 0x152   :  { %390 = vmatpush.msrb.mxu0 %v759_v14  ;;  %366 = vmatpush.msra.mxu3 %v780_v19 }
 0x154   :  { %391 = vmatpush.msrb.mxu0 %v767_v16  ;;  %367 = vmatpush.msra.mxu3 %v788_v21 }
 0x156   :  { %392 = vmatpush.msrb.mxu0 %v775_v18  ;;  %368 = vmatpush.msra.mxu3 %v796_v23 }
 0x158   :  { %393 = vmatpush.msrb.mxu0 %v783_v20  ;;  %369 = vmatpush.msra.mxu3 %v871_v28 }
 0x15a   :  { %394 = vmatpush.msrb.mxu0 %v791_v22  ;;  %370 = vmatpush.msra.mxu3 %v874_v29 }
 0x15c   :  { %395 = vmatpush.msrb.mxu0 %v799_v24  ;;  %371 = vmatpush.msra.mxu3 %v877_v30 }
 0x15e   :  { %396 = vmatpush.msrb.mxu0 %v805_v25  ;;  %372 = vmatpush.msra.mxu3 %v881_v31 }
 0x160   :  { %397 = vmatpush.msrb.mxu0 %v811_v26  ;;  %373 = vmatpush.msra.mxu3 %v885_v32 }
 0x1be   :  { %v211_v46 = vpop.f32.mrf.mxu0 }
 0x1bf   :  { %559 = vtanh.f32 %v211_v46  ;;  %v552_v46 = vld [vmem:[%s1067_s4] ss:$0 sm:$0xff] }
 0x1c4   :  { %v187_v48 = vpop.f32.mrf.mxu3 }
 0x1c5   :  { %v560_v49 = vpop.eup %559  ;;  %561 = vtanh.f32 %v187_v48 }
 0x1c6   :  { %v240_v50 = vadd.f32 %v560_v49, %v541_v47 }
 0x1c8   :  { %257 = vmatmul.f32.vlgmr.msrb.gmra.mxu2 %v240_v50 }
 0x1c9   :  { %429 = vmatpush.msrb.mxu2 %v709_v0 }
 0x1cb   :  { %v562_v51 = vpop.eup %561  ;;  %430 = vmatpush.msrb.mxu2 %v711_v1 }
 0x1cc   :  { %v215_v52 = vadd.f32 %v562_v51, %v540_v41  ;;  %v475_v41 = vld [vmem:[#allocation6 + $0x10] sm:$0xff] }
 0x1cd   :  { %431 = vmatpush.msrb.mxu2 %v715_v2 }
 0x1ce   :  { %v216_v53 = vadd.f32 %v560_v49, %v215_v52 }
 0x1cf   :  { %432 = vmatpush.msrb.mxu2 %v719_v3 }
 0x1d0   :  { %233 = vmatmul.f32.vlgmr.msrb.gmra.mxu1 %v216_v53 }
 0x1d1   :  { %433 = vmatpush.msrb.mxu2 %v725_v5  ;;  %405 = vmatpush.msrb.mxu1 %v722_v4 }
 0x1d3   :  { %434 = vmatpush.msrb.mxu2 %v735_v8  ;;  %406 = vmatpush.msrb.mxu1 %v728_v6 }
 0x1d5   :  { %435 = vmatpush.msrb.mxu2 %v743_v10  ;;  %407 = vmatpush.msrb.mxu1 %v732_v7 }
 0x1d7   :  { %436 = vmatpush.msrb.mxu2 %v751_v12  ;;  %408 = vmatpush.msrb.mxu1 %v740_v9 }
 0x1d9   :  { %437 = vmatpush.msrb.mxu2 %v759_v14  ;;  %409 = vmatpush.msrb.mxu1 %v748_v11 }
 0x1db   :  { %438 = vmatpush.msrb.mxu2 %v767_v16  ;;  %410 = vmatpush.msrb.mxu1 %v756_v13 }
 0x1dd   :  { %439 = vmatpush.msrb.mxu2 %v775_v18  ;;  %411 = vmatpush.msrb.mxu1 %v764_v15 }
 0x1df   :  { %440 = vmatpush.msrb.mxu2 %v783_v20  ;;  %412 = vmatpush.msrb.mxu1 %v772_v17 }
 0x1e1   :  { %441 = vmatpush.msrb.mxu2 %v791_v22  ;;  %413 = vmatpush.msrb.mxu1 %v780_v19  ;;  %v488_v22 = vld [vmem:[#allocation6 + $0x78] sm:$0xff] }
 0x1e3   :  { %442 = vmatpush.msrb.mxu2 %v799_v24  ;;  %414 = vmatpush.msrb.mxu1 %v788_v21  ;;  %v486_v24 = vld [vmem:[#allocation6 + $0x68] sm:$0xff] }
 0x1e5   :  { %443 = vmatpush.msrb.mxu2 %v805_v25  ;;  %415 = vmatpush.msrb.mxu1 %v796_v23  ;;  %v485_v25 = vld [vmem:[#allocation6 + $0x60] sm:$0xff] }
 0x1e7   :  { %444 = vmatpush.msrb.mxu2 %v811_v26  ;;  %416 = vmatpush.msrb.mxu1 %v871_v28  ;;  %v484_v26 = vld [vmem:[#allocation6 + $0x58] sm:$0xff] }
 0x1e9   :  { %417 = vmatpush.msrb.mxu1 %v874_v29 }
 0x1eb   :  { %418 = vmatpush.msrb.mxu1 %v877_v30 }
 0x1ed   :  { %419 = vmatpush.msrb.mxu1 %v881_v31 }
 0x1ef   :  { %420 = vmatpush.msrb.mxu1 %v885_v32 }
 0x24b   :  { %v258_v54 = vpop.f32.mrf.mxu2 }
 0x24c   :  { %563 = vtanh.f32 %v258_v54 }
 0x24d   :  { %v234_v55 = vpop.f32.mrf.mxu1 }
 0x24e   :  { %565 = vtanh.f32 %v234_v55 }
 0x252   :  { %v564_v57 = vpop.eup %563 }
 0x253   :  { %v287_v58 = vadd.f32 %v564_v57, %v542_v56 }
 0x254   :  { %v566_v59 = vpop.eup %565 }
 0x255   :  { %304 = vmatmul.f32.vlgmr.msra.gmra.mxu0 %v287_v58  ;;  %v262_v60 = vadd.f32 %v566_v59, %v541_v47 }
 0x256   :  { %493 = vmatpush.msra.mxu0 %v488_v22 }
 0x257   :  { %v263_v61 = vadd.f32 %v564_v57, %v262_v60 }
 0x259   :  { %280 = vmatmul.f32.vlgmr.msrb.gmra.mxu3 %v263_v61 }
 0x25a   :  { %452 = vmatpush.msrb.mxu3 %v722_v4 }
 0x25c   :  { %453 = vmatpush.msrb.mxu3 %v728_v6 }
 0x25e   :  { %454 = vmatpush.msrb.mxu3 %v732_v7  ;;  %v544_v7 = vld [vmem:[%s1063_s0 + $0x30] sm:$0xff] }
 0x260   :  { %455 = vmatpush.msrb.mxu3 %v740_v9 }
 0x262   :  { %456 = vmatpush.msrb.mxu3 %v748_v11 }
 0x264   :  { %457 = vmatpush.msrb.mxu3 %v756_v13 }
 0x266   :  { %458 = vmatpush.msrb.mxu3 %v764_v15  ;;  %v545_v15 = vld [vmem:[%s1063_s0 + $0x38] sm:$0xff] }
 0x268   :  { %459 = vmatpush.msrb.mxu3 %v772_v17 }
 0x26a   :  { %460 = vmatpush.msrb.mxu3 %v780_v19 }
 0x26c   :  { %461 = vmatpush.msrb.mxu3 %v788_v21 }
 0x26e   :  { %462 = vmatpush.msrb.mxu3 %v796_v23  ;;  %v487_v23 = vld [vmem:[#allocation6 + $0x70] sm:$0xff] }
 0x26f   :  { %494 = vmatpush.msra.mxu0 %v487_v23 }
 0x270   :  { %463 = vmatpush.msrb.mxu3 %v871_v28  ;;  %v482_v28 = vld [vmem:[#allocation6 + $0x48] sm:$0xff] }
 0x271   :  { %495 = vmatpush.msra.mxu0 %v486_v24 }
 0x272   :  { %464 = vmatpush.msrb.mxu3 %v874_v29  ;;  %v481_v29 = vld [vmem:[#allocation6 + $0x40] sm:$0xff] }
 0x273   :  { %496 = vmatpush.msra.mxu0 %v485_v25 }
 0x274   :  { %465 = vmatpush.msrb.mxu3 %v877_v30  ;;  %v480_v30 = vld [vmem:[#allocation6 + $0x38] sm:$0xff] }
 0x275   :  { %497 = vmatpush.msra.mxu0 %v484_v26 }
 0x276   :  { %466 = vmatpush.msrb.mxu3 %v881_v31  ;;  %v479_v31 = vld [vmem:[#allocation6 + $0x30] sm:$0xff] }
 0x277   :  { %498 = vmatpush.msra.mxu0 %v483_v27 }
 0x278   :  { %467 = vmatpush.msrb.mxu3 %v885_v32  ;;  %v478_v32 = vld [vmem:[#allocation6 + $0x28] sm:$0xff] }
 0x279   :  { %499 = vmatpush.msra.mxu0 %v482_v28 }
 0x27b   :  { %500 = vmatpush.msra.mxu0 %v481_v29 }
 0x27d   :  { %501 = vmatpush.msra.mxu0 %v480_v30 }
 0x27f   :  { %502 = vmatpush.msra.mxu0 %v479_v31 }
 0x281   :  { %503 = vmatpush.msra.mxu0 %v478_v32 }
 0x283   :  { %504 = vmatpush.msra.mxu0 %v477_v35 }
 0x285   :  { %505 = vmatpush.msra.mxu0 %v476_v40 }
 0x287   :  { %506 = vmatpush.msra.mxu0 %v475_v41 }
 0x289   :  { %507 = vmatpush.msra.mxu0 %v474_v42 }
 0x28b   :  { %508 = vmatpush.msra.mxu0 %v473_v43 }
 0x2d2   :  { %v305_v62 = vpop.f32.mrf.mxu0 }
 0x2d3   :  { %567 = vtanh.f32 %v305_v62 }
 0x2d9   :  { %v568_v0 = vpop.eup %567 }
 0x2da   :  { %v334_v1 = vadd.f32 %v568_v0, %v543_v63 }
 0x2dc   :  { %v281_v2 = vpop.f32.mrf.mxu3  ;;  %351 = vmatmul.f32.vlgmr.msra.gmra.mxu2 %v334_v1 }
 0x2dd   :  { %569 = vtanh.f32 %v281_v2 }
 0x2e3   :  { %v570_v3 = vpop.eup %569 }
 0x2e4   :  { %v309_v4 = vadd.f32 %v570_v3, %v542_v56 }
 0x2e6   :  { %v310_v5 = vadd.f32 %v568_v0, %v309_v4 }
 0x2e8   :  { %327 = vmatmul.f32.vlgmr.msra.gmra.mxu1 %v310_v5 }
 0x35f   :  { %v352_v6 = vpop.f32.mrf.mxu2 }
 0x360   :  { %571 = vtanh.f32 %v352_v6 }
 0x365   :  { %v328_v8 = vpop.f32.mrf.mxu1 }
 0x366   :  { %v572_v9 = vpop.eup %571  ;;  %573 = vtanh.f32 %v328_v8 }
 0x367   :  { %v381_v10 = vadd.f32 %v572_v9, %v544_v7 }
 0x369   :  { %398 = vmatmul.f32.vlgmr.msrb.gmra.mxu0 %v381_v10 }
 0x36c   :  { %v574_v11 = vpop.eup %573 }
 0x36d   :  { %v356_v12 = vadd.f32 %v574_v11, %v543_v63 }
 0x36f   :  { %v357_v13 = vadd.f32 %v572_v9, %v356_v12 }
 0x371   :  { %374 = vmatmul.f32.vlgmr.msra.gmra.mxu3 %v357_v13 }
 0x3e6   :  { %v399_v14 = vpop.f32.mrf.mxu0 }
 0x3e7   :  { %575 = vtanh.f32 %v399_v14 }
 0x3ed   :  { %v576_v16 = vpop.eup %575 }
 0x3ee   :  { %v428_v17 = vadd.f32 %v576_v16, %v545_v15 }
 0x3f0   :  { %445 = vmatmul.f32.vlgmr.msrb.gmra.mxu2 %v428_v17 }
 0x3f4   :  { %v375_v18 = vpop.f32.mrf.mxu3 }
 0x3f5   :  { %577 = vtanh.f32 %v375_v18 }
 0x3fb   :  { %v578_v19 = vpop.eup %577 }
 0x3fc   :  { %v403_v20 = vadd.f32 %v578_v19, %v544_v7 }
 0x3fe   :  { %v404_v21 = vadd.f32 %v576_v16, %v403_v20 }
 0x400   :  { %421 = vmatmul.f32.vlgmr.msrb.gmra.mxu1 %v404_v21 }
 0x473   :  { %v446_v33 = vpop.f32.mrf.mxu2 }
 0x47d   :  { %v422_v34 = vpop.f32.mrf.mxu1 }
 0x47e   :  { %579 = vtanh.f32 %v422_v34 }
 0x47f   :  { %581 = vtanh.f32 %v446_v33 }
 0x484   :  { %v580_v36 = vpop.eup %579 }
 0x485   :  { %v450_v37 = vadd.f32 %v580_v36, %v545_v15  ;;  %v582_v38 = vpop.eup %581 }
 0x487   :  { %v451_v39 = vadd.f32 %v582_v38, %v450_v37 }
 0x489   :  { %468 = vmatmul.f32.vlgmr.msrb.gmra.mxu3 %v451_v39 }
 0x50c   :  { %v469_v44 = vpop.f32.mrf.mxu3 }
 0x50d   :  { %583 = vtanh.f32 %v469_v44 }
 0x513   :  { %v584_v45 = vpop.eup %583 }
 0x514   :  { %509 = vmatmul.f32.vlgmr.msra.gmra.mxu0 %v584_v45 }
 0x591   :  { %v510_v47 = vpop.f32.mrf.mxu0 }
 0x592   :  { %v511_v48 = vadd.f32 %v552_v46, %v510_v47 }
 0x594   :  { %v546_v49 = vmul.f32 -1.442695, %v511_v48 }
 0x596   :  { %585 = vpow2.f32 %v546_v49 }
 0x59c   :  { %v586_v50 = vpop.eup %585 }
 0x59d   :  { %v516_v51 = vadd.f32 1.0, %v586_v50 }
 0x59f   :  { %587 = vrcp.f32 %v516_v51  ;;  %v528_v55 = vand.u32 2147483648, %v516_v51  ;;  %v526_v57 = vand.u32 2147483647, %v516_v51  ;;  %vm522_vm1 = vweird.f32 %v516_v51 }
 0x5a1   :  { %v529_v59 = vor.u32 1.1754944e-38, %v528_v55  ;;  %vm527_vm3 = vcmp.eq.f32.partialorder %v526_v57, 8.507059e+37 }
 0x5a5   :  { %v588_v52 = vpop.eup %587 }
 0x5a6   :  { %v518_v53 = vmul.f32 %v588_v52, %v516_v51  ;;  %vm523_vm0 = vweird.f32 %v588_v52 }
 0x5a7   :  { %vm524_vm2 = vmor %vm522_vm1, %vm523_vm0 }
 0x5a8   :  { %v519_v54 = vsub.f32 1.0, %v518_v53 }
 0x5aa   :  { %v520_v56 = vmul.f32 %v588_v52, %v519_v54 }
 0x5ac   :  { %v521_v58 = vadd.f32 %v588_v52, %v520_v56 }
 0x5ae   :  { %v525_v60 = vsel %vm524_vm2, %v588_v52, %v521_v58 }
 0x5af   :  { %v530_v61 = vsel %vm527_vm3, %v529_v59, %v525_v60 }
 0x5b0   :  { %532 = vst [vmem:[%s1068_s5] sm:$0xff] %v530_v61 }
 0x5b1   :  { %537 = vsyncpa [#allocation3], 1 }
 0x5b2   :  { %538 = vsyncpa [#allocation5], 1 }

</bundles_post_ra>
